<compile_context>
chip_gen: v7x
topology: tpu7x:2x2x1
jax: 0.10.0
libtpu: 0.0.40
codegen_flags: <defaults>
</compile_context>

<pallas_src>
from functools import partial

import jax
import jax.numpy as jnp
from jax.experimental import pallas as pl
from jax.experimental.pallas import tpu as pltpu


def _basic_block_kernel(x_ref, wb1_ref, b1_ref, wb2_ref, b2_ref, o_ref,
                        xpad_ref, mid_ref, *, H, WCin, WCout):
    """Fused BasicBlock body for one batch image, lane-dense (H, W*C) layout.

    conv3x3(+folded bn1)+relu -> VMEM scratch -> conv3x3(+folded bn2)
    -> +residual -> relu.  Each conv is 3 MXU matmuls against block-banded
    weight matrices (dx shifts + W zero padding folded into the band); only
    the H halo needs explicit zero rows.
    """
    # Zero only the 2 halo border rows of each scratch (cheap; interior rows
    # 1..H are fully rewritten below, so this is correct on every step and
    # under any core assignment of the parallel batch axis).
    z_in = jnp.zeros((1, WCin), jnp.float32)
    z_out = jnp.zeros((1, WCout), jnp.float32)
    xpad_ref[0:1, :] = z_in
    xpad_ref[H + 1:H + 2, :] = z_in
    mid_ref[0:1, :] = z_out
    mid_ref[H + 1:H + 2, :] = z_out

    x = x_ref[0]                                   # (H, W*Cin), read once
    xpad_ref[1:H + 1, :] = x                       # interior of H-halo scratch

    # ---- conv1 (+bn1 scale folded into weights) + bias + relu -------------
    acc1 = jnp.zeros((H, WCout), jnp.float32)
    for dy in range(3):                            # 3 matmuls, K = W*Cin
        acc1 += jnp.dot(xpad_ref[dy:dy + H, :], wb1_ref[dy],
                        preferred_element_type=jnp.float32)
    # bias + relu written straight into the conv2 input scratch interior.
    mid_ref[1:H + 1, :] = jnp.maximum(acc1 + b1_ref[...], 0.0)

    # ---- conv2 (+bn2) on the VMEM-resident intermediate --------------------
    acc2 = jnp.zeros((H, WCout), jnp.float32)
    for dy in range(3):                            # 3 matmuls, K = W*Cout
        acc2 += jnp.dot(mid_ref[dy:dy + H, :], wb2_ref[dy],
                        preferred_element_type=jnp.float32)

    out = jnp.maximum(acc2 + b2_ref[...] + x, 0.0)  # bias + residual + relu
    o_ref[0] = out.astype(o_ref.dtype)


def _basic_block_pallas(x_flat, wb1, b1, wb2, b2):
    N, H, WCin = x_flat.shape
    WCout = wb1.shape[-1]
    kernel = partial(_basic_block_kernel, H=H, WCin=WCin, WCout=WCout)
    return pl.pallas_call(
        kernel,
        out_shape=jax.ShapeDtypeStruct((N, H, WCout), jnp.float32),
        grid_spec=pltpu.PrefetchScalarGridSpec(
            num_scalar_prefetch=0,
            grid=(N,),
            in_specs=[
                pl.BlockSpec((1, H, WCin), lambda n: (n, 0, 0)),
                pl.BlockSpec((3, WCin, WCout), lambda n: (0, 0, 0)),
                pl.BlockSpec((1, WCout), lambda n: (0, 0)),
                pl.BlockSpec((3, WCout, WCout), lambda n: (0, 0, 0)),
                pl.BlockSpec((1, WCout), lambda n: (0, 0)),
            ],
            out_specs=pl.BlockSpec((1, H, WCout), lambda n: (n, 0, 0)),
            scratch_shapes=[
                pltpu.VMEM((H + 2, WCin), jnp.float32),   # H-halo input
                pltpu.VMEM((H + 2, WCout), jnp.float32),  # H-halo conv1 output
            ],
        ),
        compiler_params=pltpu.CompilerParams(
            dimension_semantics=("parallel",),
            vmem_limit_bytes=32 * 1024 * 1024,
        ),
    )(x_flat, wb1, b1, wb2, b2)


def _fold_bn(w_hwio, gamma, beta, mean, var, eps=1e-5):
    """Fold inference BatchNorm into the conv: per-output-channel scale on the
    weights plus a leftover per-channel bias."""
    scale = gamma / jnp.sqrt(var + eps)
    bias = beta - mean * scale
    return w_hwio * scale[None, None, None, :], bias


def _banded_weight(w_hwio, W):
    """(3, 3, Cin, Cout) HWIO conv weight -> (3, W*Cin, W*Cout) block-banded
    matrices.  band[dy, xin*Cin+ci, xout*Cout+co] = w[dy, xin-xout+1, ci, co]
    (zero outside the 3-tap band), which folds both the dx shifts and the
    zero padding along W into one matmul operand."""
    kh, kw, Cin, Cout = w_hwio.shape
    xin = jnp.arange(W)[:, None]
    xout = jnp.arange(W)[None, :]
    dx = xin - xout + 1                                    # tap index per (xin, xout)
    valid = (dx >= 0) & (dx < kw)                          # implicit W zero-padding
    taps = w_hwio[:, jnp.clip(dx, 0, kw - 1)]              # (kh, W, W, Cin, Cout)
    taps = jnp.where(valid[None, :, :, None, None], taps, 0.0)
    return taps.transpose(0, 1, 3, 2, 4).reshape(kh, W * Cin, W * Cout)


@jax.jit
def basic_block_forward(x_nchw, params):
    """BasicBlock forward (stride=1, no downsample). NCHW in / NCHW out."""
    N, C, H, W = x_nchw.shape
    x = jnp.transpose(x_nchw, (0, 2, 3, 1)).astype(jnp.float32)   # NCHW -> NHWC
    x_flat = x.reshape(N, H, W * C)                                # lane-dense

    w1, bias1 = _fold_bn(params["w1"], params["bn1_gamma"], params["bn1_beta"],
                         params["bn1_mean"], params["bn1_var"])
    w2, bias2 = _fold_bn(params["w2"], params["bn2_gamma"], params["bn2_beta"],
                         params["bn2_mean"], params["bn2_var"])
    Cout = w1.shape[-1]
    # Residual add requires Cin == Cout (default BasicBlock, no downsample).
    wb1 = _banded_weight(w1, W)                   # (3, W*Cin,  W*Cout)
    wb2 = _banded_weight(w2, W)                   # (3, W*Cout, W*Cout)
    b1 = jnp.tile(bias1, W).reshape(1, W * Cout)  # bias tiled to lane layout
    b2 = jnp.tile(bias2, W).reshape(1, W * Cout)

    out_flat = _basic_block_pallas(x_flat, wb1, b1, wb2, b2)
    out = out_flat.reshape(N, H, W, Cout)
    return jnp.transpose(out, (0, 3, 1, 2))       # NHWC -> NCHW


def _reference_forward(x_nchw, params):
    """Pure-JAX reference (lax conv) for the correctness check."""
    x = jnp.transpose(x_nchw, (0, 2, 3, 1))
    dn = jax.lax.conv_dimension_numbers(x.shape, params["w1"].shape,
                                        ("NHWC", "HWIO", "NHWC"))

    def conv(y, w):
        return jax.lax.conv_general_dilated(y, w, (1, 1), ((1, 1), (1, 1)),
                                            dimension_numbers=dn)

    def fold(g, b, m, v, eps=1e-5):
        s = g / jnp.sqrt(v + eps)
        return s, b - m * s

    s1, b1 = fold(params["bn1_gamma"], params["bn1_beta"],
                  params["bn1_mean"], params["bn1_var"])
    s2, b2 = fold(params["bn2_gamma"], params["bn2_beta"],
                  params["bn2_mean"], params["bn2_var"])
    out = jnp.maximum(conv(x, params["w1"]) * s1 + b1, 0.0)
    out = conv(out, params["w2"]) * s2 + b2 + x
    out = jnp.maximum(out, 0.0)
    return jnp.transpose(out, (0, 3, 1, 2))


if __name__ == "__main__":
    # Small shapes consistent with BasicBlock defaults (stride=1, downsample=None
    # => inplanes == planes).  W * C = 128 => exactly one lane-dense vreg row.
    N, C, H, W = 2, 8, 16, 16
    planes = C

    key = jax.random.PRNGKey(0)
    ks = jax.random.split(key, 10)

    x = jax.random.normal(ks[0], (N, C, H, W), jnp.float32)  # NCHW like PyTorch

    # Conv weights: PyTorch layout (Cout, Cin, 3, 3) -> HWIO (3, 3, Cin, Cout)
    w1_oihw = jax.random.normal(ks[1], (planes, C, 3, 3), jnp.float32) * 0.1
    w2_oihw = jax.random.normal(ks[2], (planes, planes, 3, 3), jnp.float32) * 0.1

    params = {
        "w1": jnp.transpose(w1_oihw, (2, 3, 1, 0)),
        "w2": jnp.transpose(w2_oihw, (2, 3, 1, 0)),
        "bn1_gamma": 1.0 + 0.1 * jax.random.normal(ks[3], (planes,), jnp.float32),
        "bn1_beta": 0.1 * jax.random.normal(ks[4], (planes,), jnp.float32),
        "bn1_mean": 0.1 * jax.random.normal(ks[5], (planes,), jnp.float32),
        "bn1_var": 1.0 + 0.1 * jax.random.uniform(ks[6], (planes,), jnp.float32),
        "bn2_gamma": 1.0 + 0.1 * jax.random.normal(ks[7], (planes,), jnp.float32),
        "bn2_beta": 0.1 * jax.random.normal(ks[8], (planes,), jnp.float32),
        "bn2_mean": 0.1 * jax.random.normal(ks[9], (planes,), jnp.float32),
        "bn2_var": jnp.ones((planes,), jnp.float32),
    }

    out = basic_block_forward(x, params)
    out = jax.block_until_ready(out)

    ref = _reference_forward(x, params)
    assert out.shape == (N, planes, H, W)
    assert jnp.allclose(out, ref, rtol=1e-4, atol=1e-4), "mismatch vs reference"

    print("KERNEL_OK")
</pallas_src>

<mosaic_0001>
module attributes {stable_mosaic.version = 11 : i64} {
  func.func @_basic_block_kernel(%arg0: i32, %arg1: memref<1x16x128xf32, #tpu.memory_space<vmem>>, %arg2: memref<3x128x128xf32, #tpu.memory_space<vmem>>, %arg3: memref<1x128xf32, #tpu.memory_space<vmem>>, %arg4: memref<3x128x128xf32, #tpu.memory_space<vmem>>, %arg5: memref<1x128xf32, #tpu.memory_space<vmem>>, %arg6: memref<1x16x128xf32, #tpu.memory_space<vmem>>, %arg7: memref<18x128xf32, #tpu.memory_space<vmem>>, %arg8: memref<18x128xf32, #tpu.memory_space<vmem>>) attributes {dimension_semantics = [#tpu.dimension_semantics<parallel>], iteration_bounds = array<i64: 2>, scalar_prefetch = 0 : i64, scratch_operands = 2 : i64, tpu.core_type = #tpu.core_type<tc>, window_params = [{transform_indices = @transform_0, window_bounds = array<i64: 1, 16, 128>}, {pipeline_mode = #tpu.pipeline_mode<synchronous>, transform_indices = @transform_1, window_bounds = array<i64: 3, 128, 128>}, {pipeline_mode = #tpu.pipeline_mode<synchronous>, transform_indices = @transform_2, window_bounds = array<i64: 1, 128>}, {pipeline_mode = #tpu.pipeline_mode<synchronous>, transform_indices = @transform_3, window_bounds = array<i64: 3, 128, 128>}, {pipeline_mode = #tpu.pipeline_mode<synchronous>, transform_indices = @transform_4, window_bounds = array<i64: 1, 128>}, {transform_indices = @transform_5, window_bounds = array<i64: 1, 16, 128>}]} {
    %cst = arith.constant 0.000000e+00 : f32
    %0 = vector.broadcast %cst : f32 to vector<1x128xf32>
    %cst_0 = arith.constant 0.000000e+00 : f32
    %1 = vector.broadcast %cst_0 : f32 to vector<1x128xf32>
    %c0 = arith.constant 0 : index
    %c0_1 = arith.constant 0 : index
    %2 = vector.load %arg7[%c0, %c0_1] : memref<18x128xf32, #tpu.memory_space<vmem>>, vector<1x128xf32>
    tpu.vector_store %arg7[%c0, %c0_1], %0 {strides = array<i32>} : memref<18x128xf32, #tpu.memory_space<vmem>>, vector<1x128xf32>,
    %c17 = arith.constant 17 : index
    %c0_2 = arith.constant 0 : index
    %3 = vector.load %arg7[%c17, %c0_2] : memref<18x128xf32, #tpu.memory_space<vmem>>, vector<1x128xf32>
    tpu.vector_store %arg7[%c17, %c0_2], %0 {strides = array<i32>} : memref<18x128xf32, #tpu.memory_space<vmem>>, vector<1x128xf32>,
    %c0_3 = arith.constant 0 : index
    %c0_4 = arith.constant 0 : index
    %4 = vector.load %arg8[%c0_3, %c0_4] : memref<18x128xf32, #tpu.memory_space<vmem>>, vector<1x128xf32>
    tpu.vector_store %arg8[%c0_3, %c0_4], %1 {strides = array<i32>} : memref<18x128xf32, #tpu.memory_space<vmem>>, vector<1x128xf32>,
    %c17_5 = arith.constant 17 : index
    %c0_6 = arith.constant 0 : index
    %5 = vector.load %arg8[%c17_5, %c0_6] : memref<18x128xf32, #tpu.memory_space<vmem>>, vector<1x128xf32>
    tpu.vector_store %arg8[%c17_5, %c0_6], %1 {strides = array<i32>} : memref<18x128xf32, #tpu.memory_space<vmem>>, vector<1x128xf32>,
    %c0_7 = arith.constant 0 : index
    %c0_8 = arith.constant 0 : index
    %c0_9 = arith.constant 0 : index
    %6 = vector.load %arg1[%c0_7, %c0_8, %c0_9] : memref<1x16x128xf32, #tpu.memory_space<vmem>>, vector<1x16x128xf32>
    %7 = vector.shape_cast %6 : vector<1x16x128xf32> to vector<16x128xf32>
    %c1 = arith.constant 1 : index
    %c0_10 = arith.constant 0 : index
    %8 = vector.load %arg7[%c1, %c0_10] : memref<18x128xf32, #tpu.memory_space<vmem>>, vector<16x128xf32>
    tpu.vector_store %arg7[%c1, %c0_10], %7 {strides = array<i32>} : memref<18x128xf32, #tpu.memory_space<vmem>>, vector<16x128xf32>,
    %cst_11 = arith.constant 0.000000e+00 : f32
    %9 = vector.broadcast %cst_11 : f32 to vector<16x128xf32>
    %c0_12 = arith.constant 0 : index
    %c0_13 = arith.constant 0 : index
    %10 = vector.load %arg7[%c0_12, %c0_13] : memref<18x128xf32, #tpu.memory_space<vmem>>, vector<16x128xf32>
    %c0_14 = arith.constant 0 : index
    %c0_15 = arith.constant 0 : index
    %c0_16 = arith.constant 0 : index
    %11 = vector.load %arg2[%c0_14, %c0_15, %c0_16] : memref<3x128x128xf32, #tpu.memory_space<vmem>>, vector<1x128x128xf32>
    %12 = vector.shape_cast %11 : vector<1x128x128xf32> to vector<128x128xf32>
    %cst_17 = arith.constant dense<0.000000e+00> : vector<16x128xf32>
    %13 = tpu.matmul %10, %12, %cst_17 {dimension_numbers = #tpu.dot_dimension_numbers<[1], [0], [0], [1], [0, 0, 1, 1], [], []>} : vector<16x128xf32>, vector<128x128xf32>, vector<16x128xf32> -> vector<16x128xf32>
    %14 = arith.addf %9, %13 : vector<16x128xf32>
    %c1_18 = arith.constant 1 : index
    %c0_19 = arith.constant 0 : index
    %15 = vector.load %arg7[%c1_18, %c0_19] : memref<18x128xf32, #tpu.memory_space<vmem>>, vector<16x128xf32>
    %c1_20 = arith.constant 1 : index
    %c0_21 = arith.constant 0 : index
    %c0_22 = arith.constant 0 : index
    %16 = vector.load %arg2[%c1_20, %c0_21, %c0_22] : memref<3x128x128xf32, #tpu.memory_space<vmem>>, vector<1x128x128xf32>
    %17 = vector.shape_cast %16 : vector<1x128x128xf32> to vector<128x128xf32>
    %cst_23 = arith.constant dense<0.000000e+00> : vector<16x128xf32>
    %18 = tpu.matmul %15, %17, %cst_23 {dimension_numbers = #tpu.dot_dimension_numbers<[1], [0], [0], [1], [0, 0, 1, 1], [], []>} : vector<16x128xf32>, vector<128x128xf32>, vector<16x128xf32> -> vector<16x128xf32>
    %19 = arith.addf %14, %18 : vector<16x128xf32>
    %c2 = arith.constant 2 : index
    %c0_24 = arith.constant 0 : index
    %20 = vector.load %arg7[%c2, %c0_24] : memref<18x128xf32, #tpu.memory_space<vmem>>, vector<16x128xf32>
    %c2_25 = arith.constant 2 : index
    %c0_26 = arith.constant 0 : index
    %c0_27 = arith.constant 0 : index
    %21 = vector.load %arg2[%c2_25, %c0_26, %c0_27] : memref<3x128x128xf32, #tpu.memory_space<vmem>>, vector<1x128x128xf32>
    %22 = vector.shape_cast %21 : vector<1x128x128xf32> to vector<128x128xf32>
    %cst_28 = arith.constant dense<0.000000e+00> : vector<16x128xf32>
    %23 = tpu.matmul %20, %22, %cst_28 {dimension_numbers = #tpu.dot_dimension_numbers<[1], [0], [0], [1], [0, 0, 1, 1], [], []>} : vector<16x128xf32>, vector<128x128xf32>, vector<16x128xf32> -> vector<16x128xf32>
    %24 = arith.addf %19, %23 : vector<16x128xf32>
    %c0_29 = arith.constant 0 : index
    %c0_30 = arith.constant 0 : index
    %25 = vector.load %arg3[%c0_29, %c0_30] : memref<1x128xf32, #tpu.memory_space<vmem>>, vector<1x128xf32>
    %26 = vector.broadcast %25 : vector<1x128xf32> to vector<16x128xf32>
    %27 = arith.addf %24, %26 : vector<16x128xf32>
    %cst_31 = arith.constant 0.000000e+00 : f32
    %28 = vector.broadcast %cst_31 : f32 to vector<16x128xf32>
    %29 = arith.maximumf %27, %28 : vector<16x128xf32>
    %c1_32 = arith.constant 1 : index
    %c0_33 = arith.constant 0 : index
    %30 = vector.load %arg8[%c1_32, %c0_33] : memref<18x128xf32, #tpu.memory_space<vmem>>, vector<16x128xf32>
    tpu.vector_store %arg8[%c1_32, %c0_33], %29 {strides = array<i32>} : memref<18x128xf32, #tpu.memory_space<vmem>>, vector<16x128xf32>,
    %cst_34 = arith.constant 0.000000e+00 : f32
    %31 = vector.broadcast %cst_34 : f32 to vector<16x128xf32>
    %c0_35 = arith.constant 0 : index
    %c0_36 = arith.constant 0 : index
    %32 = vector.load %arg8[%c0_35, %c0_36] : memref<18x128xf32, #tpu.memory_space<vmem>>, vector<16x128xf32>
    %c0_37 = arith.constant 0 : index
    %c0_38 = arith.constant 0 : index
    %c0_39 = arith.constant 0 : index
    %33 = vector.load %arg4[%c0_37, %c0_38, %c0_39] : memref<3x128x128xf32, #tpu.memory_space<vmem>>, vector<1x128x128xf32>
    %34 = vector.shape_cast %33 : vector<1x128x128xf32> to vector<128x128xf32>
    %cst_40 = arith.constant dense<0.000000e+00> : vector<16x128xf32>
    %35 = tpu.matmul %32, %34, %cst_40 {dimension_numbers = #tpu.dot_dimension_numbers<[1], [0], [0], [1], [0, 0, 1, 1], [], []>} : vector<16x128xf32>, vector<128x128xf32>, vector<16x128xf32> -> vector<16x128xf32>
    %36 = arith.addf %31, %35 : vector<16x128xf32>
    %c1_41 = arith.constant 1 : index
    %c0_42 = arith.constant 0 : index
    %37 = vector.load %arg8[%c1_41, %c0_42] : memref<18x128xf32, #tpu.memory_space<vmem>>, vector<16x128xf32>
    %c1_43 = arith.constant 1 : index
    %c0_44 = arith.constant 0 : index
    %c0_45 = arith.constant 0 : index
    %38 = vector.load %arg4[%c1_43, %c0_44, %c0_45] : memref<3x128x128xf32, #tpu.memory_space<vmem>>, vector<1x128x128xf32>
    %39 = vector.shape_cast %38 : vector<1x128x128xf32> to vector<128x128xf32>
    %cst_46 = arith.constant dense<0.000000e+00> : vector<16x128xf32>
    %40 = tpu.matmul %37, %39, %cst_46 {dimension_numbers = #tpu.dot_dimension_numbers<[1], [0], [0], [1], [0, 0, 1, 1], [], []>} : vector<16x128xf32>, vector<128x128xf32>, vector<16x128xf32> -> vector<16x128xf32>
    %41 = arith.addf %36, %40 : vector<16x128xf32>
    %c2_47 = arith.constant 2 : index
    %c0_48 = arith.constant 0 : index
    %42 = vector.load %arg8[%c2_47, %c0_48] : memref<18x128xf32, #tpu.memory_space<vmem>>, vector<16x128xf32>
    %c2_49 = arith.constant 2 : index
    %c0_50 = arith.constant 0 : index
    %c0_51 = arith.constant 0 : index
    %43 = vector.load %arg4[%c2_49, %c0_50, %c0_51] : memref<3x128x128xf32, #tpu.memory_space<vmem>>, vector<1x128x128xf32>
    %44 = vector.shape_cast %43 : vector<1x128x128xf32> to vector<128x128xf32>
    %cst_52 = arith.constant dense<0.000000e+00> : vector<16x128xf32>
    %45 = tpu.matmul %42, %44, %cst_52 {dimension_numbers = #tpu.dot_dimension_numbers<[1], [0], [0], [1], [0, 0, 1, 1], [], []>} : vector<16x128xf32>, vector<128x128xf32>, vector<16x128xf32> -> vector<16x128xf32>
    %46 = arith.addf %41, %45 : vector<16x128xf32>
    %c0_53 = arith.constant 0 : index
    %c0_54 = arith.constant 0 : index
    %47 = vector.load %arg5[%c0_53, %c0_54] : memref<1x128xf32, #tpu.memory_space<vmem>>, vector<1x128xf32>
    %48 = vector.broadcast %47 : vector<1x128xf32> to vector<16x128xf32>
    %49 = arith.addf %46, %48 : vector<16x128xf32>
    %50 = arith.addf %49, %7 : vector<16x128xf32>
    %cst_55 = arith.constant 0.000000e+00 : f32
    %51 = vector.broadcast %cst_55 : f32 to vector<16x128xf32>
    %52 = arith.maximumf %50, %51 : vector<16x128xf32>
    %c0_56 = arith.constant 0 : index
    %c0_57 = arith.constant 0 : index
    %c0_58 = arith.constant 0 : index
    %53 = vector.load %arg6[%c0_56, %c0_57, %c0_58] : memref<1x16x128xf32, #tpu.memory_space<vmem>>, vector<1x16x128xf32>
    %54 = vector.shape_cast %53 : vector<1x16x128xf32> to vector<16x128xf32>
    %55 = vector.shape_cast %52 : vector<16x128xf32> to vector<1x16x128xf32>
    tpu.vector_store %arg6[%c0_56, %c0_57, %c0_58], %55 {strides = array<i32>} : memref<1x16x128xf32, #tpu.memory_space<vmem>>, vector<1x16x128xf32>,
    return
  }
  func.func @transform_0(%arg0: i32) -> (i32, i32, i32) {
    %c0_i32 = arith.constant 0 : i32
    %c0_i32_0 = arith.constant 0 : i32
    %c0_i32_1 = arith.constant 0 : i32
    return %arg0, %c0_i32, %c0_i32_0 : i32, i32, i32
  }
  func.func @transform_1(%arg0: i32) -> (i32, i32, i32) {
    %c0_i32 = arith.constant 0 : i32
    %c0_i32_0 = arith.constant 0 : i32
    %c0_i32_1 = arith.constant 0 : i32
    %c0_i32_2 = arith.constant 0 : i32
    return %c0_i32, %c0_i32_0, %c0_i32_1 : i32, i32, i32
  }
  func.func @transform_2(%arg0: i32) -> (i32, i32) {
    %c0_i32 = arith.constant 0 : i32
    %c0_i32_0 = arith.constant 0 : i32
    %c0_i32_1 = arith.constant 0 : i32
    return %c0_i32, %c0_i32_0 : i32, i32
  }
  func.func @transform_3(%arg0: i32) -> (i32, i32, i32) {
    %c0_i32 = arith.constant 0 : i32
    %c0_i32_0 = arith.constant 0 : i32
    %c0_i32_1 = arith.constant 0 : i32
    %c0_i32_2 = arith.constant 0 : i32
    return %c0_i32, %c0_i32_0, %c0_i32_1 : i32, i32, i32
  }
  func.func @transform_4(%arg0: i32) -> (i32, i32) {
    %c0_i32 = arith.constant 0 : i32
    %c0_i32_0 = arith.constant 0 : i32
    %c0_i32_1 = arith.constant 0 : i32
    return %c0_i32, %c0_i32_0 : i32, i32
  }
  func.func @transform_5(%arg0: i32) -> (i32, i32, i32) {
    %c0_i32 = arith.constant 0 : i32
    %c0_i32_0 = arith.constant 0 : i32
    %c0_i32_1 = arith.constant 0 : i32
    return %arg0, %c0_i32, %c0_i32_0 : i32, i32, i32
  }
}

</mosaic_0001>

<bundles_post_ra>
// kernel: tile.13
= control target key start
LH: loop header
LB: loop body
LE: loop exit
PB: predicated region body
PF: predicated region fallthrough
CT: control target
= control target key end

     0   :  { %s28_s0 = inlined_call_operand.vmem [shape: f32[8], index: 0, kind: input, shape index: {}]   ;;  %s29_s1 = inlined_call_operand.vmem [shape: f32[16,8], index: 1, kind: output, shape index: {}]  }
   0x1   :  { %v4_v0 = vld [vmem:[%s28_s0] ss:$0 sm:$0xff] }
   0x2   :  { %5 = vst [vmem:[%s29_s1] sm:$0xff] %v4_v0  ;;  %8 = vst [vmem:[%s29_s1 + $0x8] sm:$0xff] %v4_v0 }

// kernel: tile.14
= control target key start
LH: loop header
LB: loop body
LE: loop exit
PB: predicated region body
PF: predicated region fallthrough
CT: control target
= control target key end

     0   :  { %s131_s10 = smov 120   ;;  %s132_s11 = smov 104   ;;  %vm3_vm0 = vcmask 64512   ;;  %vm9_vm1 = vcmask 1048512   ;;  %vm15_vm2 = vcmask 982912   ;;  %vm21_vm3 = vcmask 917312   ;;  %s207_s0 = inlined_call_operand.vmem [shape: f32[16,8], index: 0, kind: input, shape index: {}]   ;;  %s208_s1 = inlined_call_operand.vmem [shape: f32[1,128], index: 1, kind: output, shape index: {}]  }
   0x1   :  { %v101_v0 = vld [vmem:[%s207_s0 + $0xf] sm:$0x1]   ;;  %v103_v1 = vld [vmem:[%s207_s0 + $0xd] sm:$0x1]   ;;  %v102_v2 = vld [vmem:[%s207_s0 + $0xe] sm:$0x1]  }
   0x2   :  { %7 = vrot.lane.b32.xlu0 %v101_v0, %s131_s10  ;;  %19 = vrot.lane.b32.xlu1 %v103_v1, %s132_s11  ;;  %v104_v3 = vld [vmem:[%s207_s0 + $0xc] sm:$0x1]   ;;  %s133_s16 = smov 112   ;;  %s134_s17 = smov 96   ;;  %v105_v4 = vld [vmem:[%s207_s0 + $0xb] sm:$0x1]  }
   0x3   :  { %v106_v5 = vld [vmem:[%s207_s0 + $0xa] sm:$0x1]   ;;  %v2_v6 = vld [vmem:[%s207_s0] sm:$0x1]   ;;  %s135_s24 = smov 88   ;;  %s136_s25 = smov 80  }
   0x4   :  { %4 = vst.msk [vmem:[#allocation0] sm:$0x1] %vm3_vm0, %v2_v6   ;;  %v107_v7 = vld [vmem:[%s207_s0 + $0x9] sm:$0x1]   ;;  %v108_v8 = vld [vmem:[%s207_s0 + $0x8] sm:$0x1]  }
   0x5   :  { %s137_s30 = smov 72   ;;  %s138_s2 = smov 64   ;;  %v109_v9 = vld [vmem:[%s207_s0 + $0x7] sm:$0x1]   ;;  %v110_v10 = vld [vmem:[%s207_s0 + $0x6] sm:$0x1]  }
   0x6   :  { %13 = vrot.lane.b32.xlu0 %v102_v2, %s133_s16  ;;  %25 = vrot.lane.b32.xlu1 %v104_v3, %s134_s17  ;;  %s139_s7 = smov 56   ;;  %s140_s8 = smov 48   ;;  %v111_v11 = vld [vmem:[%s207_s0 + $0x5] sm:$0x1]   ;;  %v112_v12 = vld [vmem:[%s207_s0 + $0x4] sm:$0x1]  }
   0x7   :  { %s141_s13 = smov 40   ;;  %s142_s14 = smov 32   ;;  %v113_v13 = vld [vmem:[%s207_s0 + $0x3] sm:$0x1]   ;;  %v114_v14 = vld [vmem:[%s207_s0 + $0x2] sm:$0x1]  }
   0x8   :  { %s143_s19 = smov 24   ;;  %s144_s20 = smov 16   ;;  %v115_v15 = vld [vmem:[%s207_s0 + $0x1] sm:$0x1]   ;;  %vm27_vm4 = vcmask 851712   ;;  %vm33_vm5 = vcmask 786112  }
   0x9   :  { %s145_s0 = smov 8   ;;  %vm39_vm6 = vcmask 720512   ;;  %vm45_vm7 = vcmask 654912   ;;  %vm51_vm8 = vcmask 589312   ;;  %vm57_vm9 = vcmask 523712  }
   0xa   :  { %31 = vrot.lane.b32.xlu0 %v105_v4, %s135_s24  ;;  %37 = vrot.lane.b32.xlu1 %v106_v5, %s136_s25  ;;  %vm63_vm10 = vcmask 458112   ;;  %vm69_vm11 = vcmask 392512   ;;  %vm75_vm12 = vcmask 326912   ;;  %vm81_vm13 = vcmask 261312  }
   0xb   :  { %vm87_vm14 = vcmask 195712   ;;  %vm93_vm15 = vcmask 130112  }
   0xe   :  { %43 = vrot.lane.b32.xlu0 %v107_v7, %s137_s30  ;;  %49 = vrot.lane.b32.xlu1 %v108_v8, %s138_s2 }
  0x12   :  { %55 = vrot.lane.b32.xlu0 %v109_v9, %s139_s7  ;;  %61 = vrot.lane.b32.xlu1 %v110_v10, %s140_s8 }
  0x16   :  { %67 = vrot.lane.b32.xlu0 %v111_v11, %s141_s13  ;;  %73 = vrot.lane.b32.xlu1 %v112_v12, %s142_s14 }
  0x1a   :  { %79 = vrot.lane.b32.xlu0 %v113_v13, %s143_s19  ;;  %85 = vrot.lane.b32.xlu1 %v114_v14, %s144_s20 }
  0x1e   :  { %91 = vrot.lane.b32.xlu0 %v115_v15, %s145_s0 }
  0x74   :  { %v8_v16 = vpop.permute.xlu0 %7   ;;  %v20_v17 = vpop.permute.xlu1 %19  }
  0x75   :  { %10 = vst.msk [vmem:[#allocation0] sm:$0x1] %vm9_vm1, %v8_v16  }
  0x78   :  { %v14_v18 = vpop.permute.xlu0 %13   ;;  %v26_v19 = vpop.permute.xlu1 %25  }
  0x79   :  { %16 = vst.msk [vmem:[#allocation0] sm:$0x1] %vm15_vm2, %v14_v18  }
  0x7a   :  { %22 = vst.msk [vmem:[#allocation0] sm:$0x1] %vm21_vm3, %v20_v17  }
  0x7b   :  { %28 = vst.msk [vmem:[#allocation0] sm:$0x1] %vm27_vm4, %v26_v19  }
  0x7c   :  { %v32_v20 = vpop.permute.xlu0 %31   ;;  %v38_v21 = vpop.permute.xlu1 %37  }
  0x7d   :  { %34 = vst.msk [vmem:[#allocation0] sm:$0x1] %vm33_vm5, %v32_v20  }
  0x7e   :  { %40 = vst.msk [vmem:[#allocation0] sm:$0x1] %vm39_vm6, %v38_v21  }
  0x80   :  { %v44_v22 = vpop.permute.xlu0 %43   ;;  %v50_v23 = vpop.permute.xlu1 %49  }
  0x81   :  { %46 = vst.msk [vmem:[#allocation0] sm:$0x1] %vm45_vm7, %v44_v22  }
  0x82   :  { %52 = vst.msk [vmem:[#allocation0] sm:$0x1] %vm51_vm8, %v50_v23  }
  0x84   :  { %v56_v24 = vpop.permute.xlu0 %55   ;;  %v62_v25 = vpop.permute.xlu1 %61  }
  0x85   :  { %58 = vst.msk [vmem:[#allocation0] sm:$0x1] %vm57_vm9, %v56_v24  }
  0x86   :  { %64 = vst.msk [vmem:[#allocation0] sm:$0x1] %vm63_vm10, %v62_v25  }
  0x88   :  { %v68_v26 = vpop.permute.xlu0 %67   ;;  %v74_v27 = vpop.permute.xlu1 %73  }
  0x89   :  { %70 = vst.msk [vmem:[#allocation0] sm:$0x1] %vm69_vm11, %v68_v26  }
  0x8a   :  { %76 = vst.msk [vmem:[#allocation0] sm:$0x1] %vm75_vm12, %v74_v27  }
  0x8c   :  { %v80_v28 = vpop.permute.xlu0 %79   ;;  %v86_v29 = vpop.permute.xlu1 %85  }
  0x8d   :  { %82 = vst.msk [vmem:[#allocation0] sm:$0x1] %vm81_vm13, %v80_v28  }
  0x8e   :  { %88 = vst.msk [vmem:[#allocation0] sm:$0x1] %vm87_vm14, %v86_v29  }
  0x90   :  { %v92_v30 = vpop.permute.xlu0 %91  }
  0x91   :  { %94 = vst.msk [vmem:[#allocation0] sm:$0x1] %vm93_vm15, %v92_v30  }
  0x98   :  { %v98_v31 = vld [vmem:[#allocation0] sm:$0x1] }
  0x99   :  { %100 = vst [vmem:[%s208_s1] sm:$0x1] %v98_v31 }

// kernel: basic_block_forward.1
= control target key start
LH: loop header
LB: loop body
LE: loop exit
PB: predicated region body
PF: predicated region fallthrough
CT: control target
= control target key end

     0   :  { %s1527_s18 = smov 0   ;;  %s1855_s0 = inlined_call_operand.vmem [shape: f32[2,16,128], index: 0, kind: input, shape index: {}]   ;;  %s1856_s1 = inlined_call_operand.vmem [shape: f32[3,128,128], index: 1, kind: input, shape index: {}]   ;;  %s1857_s2 = inlined_call_operand.vmem [shape: f32[1,128], index: 2, kind: input, shape index: {}]   ;;  %s1858_s3 = inlined_call_operand.vmem [shape: f32[3,128,128], index: 3, kind: input, shape index: {}]   ;;  %s1859_s4 = inlined_call_operand.vmem [shape: f32[1,128], index: 4, kind: input, shape index: {}]   ;;  %s1860_s5 = inlined_call_operand.vmem [shape: f32[2,16,128], index: 5, kind: output, shape index: {}]  }
   0x1 LB: > { %s882_s19 = sadd.s32 4294967295, %s1494_s18   ;;  %p886_p0 = scmp.ge.s32.totalorder %s1494_s18, 1  ;;  %s1494_s18 = sphi %s1527_s18, %s15_s18  }
   0x2   : > { %p187_p1 = scmp.lt.s32.totalorder %s1494_s18, 3 }
   0x4   : > { %p188_p2 = pnand %p886_p0, %p187_p1 }
   0x5   : > { %v891_v0 = vld [vmem:[%s1856_s1 + $0x80] sm:$0xff] (!%p188_p2)  ;;  %v892_v1 = vld [vmem:[%s1856_s1 + $0x88] sm:$0xff] (!%p188_p2)  ;;  %v893_v2 = vld [vmem:[%s1856_s1 + $0x90] sm:$0xff] (!%p188_p2)  ;;  %p215_p3 = scmp.lt.s32.totalorder (!%p188_p2), %s882_s19, 1  ;;  %v1496_v5 = vmov (!%p188_p2), 0.0  }
   0x6   : > { %191 = sbr.rel (%p188_p2) target bundleno = 606 (0x25e), region = 40  ;;  %v1279_v3 = vpack.c.bf16 (!%p188_p2), %v892_v1, %v891_v0  ;;  %v894_v4 = vld [vmem:[%s1856_s1 + $0x98] sm:$0xff] (!%p188_p2)  ;;  %225 = vst [vmem:[#allocation2] sm:$0x1] (!%p188_p2), %v1496_v5  ;;  %226 = vst [vmem:[#allocation2 + $0x11] sm:$0x1] (!%p188_p2), %v1496_v5 }
   0x7   : > { %227 = vst [vmem:[#allocation3] sm:$0x1] (!%p188_p2), %v1496_v5  ;;  %228 = vst [vmem:[#allocation3 + $0x11] sm:$0x1] (!%p188_p2), %v1496_v5  ;;  %v1283_v6 = vpack.c.bf16 (!%p188_p2), %v894_v4, %v893_v2  ;;  %v895_v7 = vld [vmem:[%s1856_s1 + $0xa0] sm:$0xff] (!%p188_p2)  ;;  %v896_v8 = vld [vmem:[%s1856_s1 + $0xa8] sm:$0xff] (!%p188_p2) }
   0x8   : > { %1280 = vmatprep.subr.bf16.mxu0 (!%p188_p2), %v1279_v3  ;;  %v1287_v9 = vpack.c.bf16 (!%p188_p2), %v896_v8, %v895_v7  ;;  %v897_v10 = vld [vmem:[%s1856_s1 + $0xb0] sm:$0xff] (!%p188_p2)  ;;  %v898_v11 = vld [vmem:[%s1856_s1 + $0xb8] sm:$0xff] (!%p188_p2)  ;;  %v899_v15 = vld [vmem:[%s1856_s1 + $0xc0] sm:$0xff] (!%p188_p2) }
   0x9   : > { %1282 = vmatpush3.bf16.msra.mxu0 (!%p188_p2), %v1279_v3  ;;  %v1291_v14 = vpack.c.bf16 (!%p188_p2), %v898_v11, %v897_v10  ;;  %v900_v16 = vld [vmem:[%s1856_s1 + $0xc8] sm:$0xff] (!%p188_p2)  ;;  %v901_v18 = vld [vmem:[%s1856_s1 + $0xd0] sm:$0xff] (!%p188_p2)  ;;  %v902_v19 = vld [vmem:[%s1856_s1 + $0xd8] sm:$0xff] (!%p188_p2) }
   0xa   : > { %1284 = vmatprep.subr.bf16.mxu0 (!%p188_p2), %v1283_v6  ;;  %v1295_v17 = vpack.c.bf16 (!%p188_p2), %v900_v16, %v899_v15  ;;  %v1299_v20 = vpack.c.bf16 (!%p188_p2), %v902_v19, %v901_v18  ;;  %v903_v21 = vld [vmem:[%s1856_s1 + $0xe0] sm:$0xff] (!%p188_p2)  ;;  %v904_v22 = vld [vmem:[%s1856_s1 + $0xe8] sm:$0xff] (!%p188_p2)  ;;  %v926_v25 = vld [vmem:[%s1858_s3 + $0x90] sm:$0xff] (!%p188_p2) }
   0xb   : > { %v924_v23 = vld [vmem:[%s1858_s3 + $0x80] sm:$0xff] (!%p188_p2)  ;;  %v925_v24 = vld [vmem:[%s1858_s3 + $0x88] sm:$0xff] (!%p188_p2)  ;;  %v927_v27 = vld [vmem:[%s1858_s3 + $0x98] sm:$0xff] (!%p188_p2)  ;;  %v1303_v31 = vpack.c.bf16 (!%p188_p2), %v904_v22, %v903_v21 }
   0xc   : > { %v1375_v26 = vpack.c.bf16 (!%p188_p2), %v925_v24, %v924_v23  ;;  %v1379_v28 = vpack.c.bf16 (!%p188_p2), %v927_v27, %v926_v25  ;;  %v928_v29 = vld [vmem:[%s1858_s3 + $0xa0] sm:$0xff] (!%p188_p2)  ;;  %v929_v30 = vld [vmem:[%s1858_s3 + $0xa8] sm:$0xff] (!%p188_p2)  ;;  %v905_v32 = vld [vmem:[%s1856_s1 + $0xf0] sm:$0xff] (!%p188_p2) }
   0xd   : > { %s1862_s19 = smov (!%p215_p3, %s882_s19), 1  ;;  %1286 = vmatpush3.bf16.msra.mxu0 %v1283_v6  ;;  %v906_v33 = vld [vmem:[%s1856_s1 + $0xf8] sm:$0xff]  ;;  %v1383_v34 = vpack.c.bf16 %v929_v30, %v928_v29  ;;  %v930_v35 = vld [vmem:[%s1858_s3 + $0xb0] sm:$0xff]  ;;  %v235_v38 = vld [vmem:[%s1856_s1] sm:$0xff] }
   0xe   : > { %s959_s7 = sshll.u32 %s1862_s19, 4  ;;  %1288 = vmatprep.subr.bf16.mxu0 %v1287_v9  ;;  %1376 = vmatprep.subr.bf16.mxu1 %v1375_v26  ;;  %v931_v36 = vld [vmem:[%s1858_s3 + $0xb8] sm:$0xff]  ;;  %v1307_v37 = vpack.c.bf16 %v906_v33, %v905_v32  ;;  %v236_v39 = vld [vmem:[%s1856_s1 + $0x8] sm:$0xff]  ;;  %v932_v41 = vld [vmem:[%s1858_s3 + $0xc0] sm:$0xff] }
   0xf   : > { %s219_s12 = scalar_lea.vmem %s1855_s0, %s959_s7  ;;  %1378 = vmatpush3.bf16.msra.mxu1 %v1375_v26  ;;  %v1387_v40 = vpack.c.bf16 %v931_v36, %v930_v35  ;;  %v933_v42 = vld [vmem:[%s1858_s3 + $0xc8] sm:$0xff]  ;;  %v1311_v43 = vpack.c.bf16 %v236_v39, %v235_v38  ;;  %v237_v44 = vld [vmem:[%s1856_s1 + $0x10] sm:$0xff]  ;;  %v238_v45 = vld [vmem:[%s1856_s1 + $0x18] sm:$0xff]  ;;  %s224_s23 = scalar_lea.vmem %s1860_s5, %s959_s7 }
  0x10   : > { %v1567_v12 = vld [vmem:[%s219_s12] sm:$0xff]  ;;  %v1569_v13 = vld [vmem:[%s219_s12 + $0x8] sm:$0xff]  ;;  %1380 = vmatprep.subr.bf16.mxu1 %v1379_v28  ;;  %v1391_v46 = vpack.c.bf16 %v933_v42, %v932_v41  ;;  %v1315_v47 = vpack.c.bf16 %v238_v45, %v237_v44  ;;  %v241_v52 = vld [vmem:[%s1856_s1 + $0x30] sm:$0xff] }
  0x11   : > { %231 = vst [vmem:[#allocation2 + $0x1] sm:$0xff] %v1567_v12  ;;  %1101 = vmatprep.mubr.f32.mxu0 %v1567_v12  ;;  %232 = vst [vmem:[#allocation2 + $0x9] sm:$0xff] %v1569_v13  ;;  %1290 = vmatpush3.bf16.msra.mxu0 %v1287_v9  ;;  %v239_v49 = vld [vmem:[%s1856_s1 + $0x20] sm:$0xff]  ;;  %v240_v50 = vld [vmem:[%s1856_s1 + $0x28] sm:$0xff] }
  0x12   : > { %1292 = vmatprep.subr.bf16.mxu0 %v1291_v14  ;;  %v1319_v51 = vpack.c.bf16 %v240_v50, %v239_v49  ;;  %v242_v53 = vld [vmem:[%s1856_s1 + $0x38] sm:$0xff]  ;;  %v243_v55 = vld [vmem:[%s1856_s1 + $0x40] sm:$0xff]  ;;  %v244_v56 = vld [vmem:[%s1856_s1 + $0x48] sm:$0xff] }
  0x13   : > { %1382 = vmatpush3.bf16.msra.mxu1 %v1379_v28  ;;  %v1323_v54 = vpack.c.bf16 %v242_v53, %v241_v52  ;;  %v1327_v57 = vpack.c.bf16 %v244_v56, %v243_v55  ;;  %v245_v58 = vld [vmem:[%s1856_s1 + $0x50] sm:$0xff]  ;;  %v246_v59 = vld [vmem:[%s1856_s1 + $0x58] sm:$0xff]  ;;  %v247_v61 = vld [vmem:[%s1856_s1 + $0x60] sm:$0xff] }
  0x14   : > { %1384 = vmatprep.subr.bf16.mxu1 %v1383_v34  ;;  %v1331_v60 = vpack.c.bf16 %v246_v59, %v245_v58  ;;  %v248_v62 = vld [vmem:[%s1856_s1 + $0x68] sm:$0xff]  ;;  %v249_v0 = vld [vmem:[%s1856_s1 + $0x70] sm:$0xff]  ;;  %v250_v1 = vld [vmem:[%s1856_s1 + $0x78] sm:$0xff] }
  0x15   : > { %1294 = vmatpush3.bf16.msra.mxu0 %v1291_v14  ;;  %v1335_v63 = vpack.c.bf16 %v248_v62, %v247_v61  ;;  %v1339_v2 = vpack.c.bf16 %v250_v1, %v249_v0  ;;  %v907_v3 = vld [vmem:[%s1856_s1 + $0x100] sm:$0xff]  ;;  %v908_v4 = vld [vmem:[%s1856_s1 + $0x108] sm:$0xff]  ;;  %v909_v6 = vld [vmem:[%s1856_s1 + $0x110] sm:$0xff] }
  0x16   : > { %1296 = vmatprep.subr.bf16.mxu0 %v1295_v17  ;;  %v1343_v5 = vpack.c.bf16 %v908_v4, %v907_v3  ;;  %v910_v7 = vld [vmem:[%s1856_s1 + $0x118] sm:$0xff]  ;;  %v911_v11 = vld [vmem:[%s1856_s1 + $0x120] sm:$0xff]  ;;  %v912_v14 = vld [vmem:[%s1856_s1 + $0x128] sm:$0xff] }
  0x17   : > { %1386 = vmatpush3.bf16.msra.mxu1 %v1383_v34  ;;  %v1347_v9 = vpack.c.bf16 %v910_v7, %v909_v6  ;;  %v1351_v15 = vpack.c.bf16 %v912_v14, %v911_v11  ;;  %v913_v16 = vld [vmem:[%s1856_s1 + $0x130] sm:$0xff]  ;;  %v915_v19 = vld [vmem:[%s1856_s1 + $0x140] sm:$0xff]  ;;  %v918_v23 = vld [vmem:[%s1856_s1 + $0x158] sm:$0xff] }
  0x18   : > { %1388 = vmatprep.subr.bf16.mxu1 %v1387_v40  ;;  %v233_v48 = vld [vmem:[#allocation2] sm:$0xff]  ;;  %v234_v8 = vld [vmem:[#allocation2 + $0x8] sm:$0xff]  ;;  %v917_v22 = vld [vmem:[%s1856_s1 + $0x150] sm:$0xff] }
  0x19   : > { %1298 = vmatpush3.bf16.msra.mxu0 %v1295_v17  ;;  %v420_v10 = vld [vmem:[#allocation2 + $0x2] sm:$0xff]  ;;  %v914_v17 = vld [vmem:[%s1856_s1 + $0x138] sm:$0xff]  ;;  %v1363_v24 = vpack.c.bf16 %v918_v23, %v917_v22  ;;  %v921_v28 = vld [vmem:[%s1856_s1 + $0x170] sm:$0xff] }
  0x1a   : > { %1300 = vmatprep.subr.bf16.mxu0 %v1299_v20  ;;  %v1355_v18 = vpack.c.bf16 %v914_v17, %v913_v16  ;;  %v919_v25 = vld [vmem:[%s1856_s1 + $0x160] sm:$0xff]  ;;  %v920_v26 = vld [vmem:[%s1856_s1 + $0x168] sm:$0xff]  ;;  %v922_v29 = vld [vmem:[%s1856_s1 + $0x178] sm:$0xff] }
  0x1b   : > { %1390 = vmatpush3.bf16.msra.mxu1 %v1387_v40  ;;  %v1367_v27 = vpack.c.bf16 %v920_v26, %v919_v25  ;;  %v1371_v30 = vpack.c.bf16 %v922_v29, %v921_v28  ;;  %v934_v32 = vld [vmem:[%s1858_s3 + $0xd0] sm:$0xff]  ;;  %v935_v33 = vld [vmem:[%s1858_s3 + $0xd8] sm:$0xff]  ;;  %v936_v35 = vld [vmem:[%s1858_s3 + $0xe0] sm:$0xff] }
  0x1c   : > { %1392 = vmatprep.subr.bf16.mxu1 %v1391_v46  ;;  %v1395_v34 = vpack.c.bf16 %v935_v33, %v934_v32  ;;  %v937_v36 = vld [vmem:[%s1858_s3 + $0xe8] sm:$0xff]  ;;  %v938_v38 = vld [vmem:[%s1858_s3 + $0xf0] sm:$0xff]  ;;  %v939_v39 = vld [vmem:[%s1858_s3 + $0xf8] sm:$0xff] }
  0x1d   : > { %1302 = vmatpush3.bf16.msra.mxu0 %v1299_v20  ;;  %v916_v20 = vld [vmem:[%s1856_s1 + $0x148] sm:$0xff]  ;;  %v1403_v40 = vpack.c.bf16 %v939_v39, %v938_v38  ;;  %v531_v41 = vld [vmem:[%s1858_s3] sm:$0xff]  ;;  %v533_v49 = vld [vmem:[%s1858_s3 + $0x10] sm:$0xff] }
  0x1e   : > { %1304 = vmatprep.subr.bf16.mxu0 %v1303_v31  ;;  %v1359_v21 = vpack.c.bf16 %v916_v20, %v915_v19  ;;  %v532_v42 = vld [vmem:[%s1858_s3 + $0x8] sm:$0xff]  ;;  %v923_v44 = vld [vmem:[%s1857_s2] ss:$0 sm:$0xff]  ;;  %v534_v50 = vld [vmem:[%s1858_s3 + $0x18] sm:$0xff] }
  0x1f   : > { %1394 = vmatpush3.bf16.msra.mxu1 %v1391_v46  ;;  %v1411_v53 = vpack.c.bf16 %v534_v50, %v533_v49  ;;  %v536_v55 = vld [vmem:[%s1858_s3 + $0x28] sm:$0xff]  ;;  %v538_v58 = vld [vmem:[%s1858_s3 + $0x38] sm:$0xff]  ;;  %v539_v61 = vld [vmem:[%s1858_s3 + $0x40] sm:$0xff] }
  0x20   : > { %1396 = vmatprep.subr.bf16.mxu1 %v1395_v34  ;;  %v540_v62 = vld [vmem:[%s1858_s3 + $0x48] sm:$0xff]  ;;  %v541_v0 = vld [vmem:[%s1858_s3 + $0x50] sm:$0xff]  ;;  %v542_v1 = vld [vmem:[%s1858_s3 + $0x58] sm:$0xff] }
  0x21   : > { %1306 = vmatpush3.bf16.msra.mxu0 %v1303_v31  ;;  %v421_v31 = vld [vmem:[#allocation2 + $0xa] sm:$0xff]  ;;  %v543_v3 = vld [vmem:[%s1858_s3 + $0x60] sm:$0xff]  ;;  %v546_v7 = vld [vmem:[%s1858_s3 + $0x78] sm:$0xff] }
  0x22   : > { %1308 = vmatprep.subr.bf16.mxu0 %v1307_v37  ;;  %v544_v4 = vld [vmem:[%s1858_s3 + $0x68] sm:$0xff]  ;;  %v545_v6 = vld [vmem:[%s1858_s3 + $0x70] sm:$0xff]  ;;  %v947_v23 = vld [vmem:[%s1858_s3 + $0x138] sm:$0xff] }
  0x23   : > { %1398 = vmatpush3.bf16.msra.mxu1 %v1395_v34  ;;  %v942_v14 = vld [vmem:[%s1858_s3 + $0x110] sm:$0xff]  ;;  %v945_v19 = vld [vmem:[%s1858_s3 + $0x128] sm:$0xff]  ;;  %v948_v25 = vld [vmem:[%s1858_s3 + $0x140] sm:$0xff] }
  0x24   : > { %v946_v22 = vld [vmem:[%s1858_s3 + $0x130] sm:$0xff]  ;;  %v949_v26 = vld [vmem:[%s1858_s3 + $0x148] sm:$0xff]  ;;  %v951_v29 = vld [vmem:[%s1858_s3 + $0x158] sm:$0xff] }
  0x25   : > { %1310 = vmatpush3.bf16.msra.mxu0 %v1307_v37  ;;  %v1399_v37 = vpack.c.bf16 %v937_v36, %v936_v35  ;;  %v950_v28 = vld [vmem:[%s1858_s3 + $0x150] sm:$0xff]  ;;  %v953_v32 = vld [vmem:[%s1858_s3 + $0x168] sm:$0xff]  ;;  %v955_v35 = vld [vmem:[%s1858_s3 + $0x178] sm:$0xff] }
  0x26   : > { %1312 = vmatprep.subr.bf16.mxu0 %v1311_v43  ;;  %v954_v34 = vld [vmem:[%s1858_s3 + $0x170] sm:$0xff]  ;;  %v956_v38 = vld [vmem:[%s1859_s4] ss:$0 sm:$0xff] }
  0x27   : > { %1400 = vmatprep.subr.bf16.mxu1 %v1399_v37  ;;  %v1467_v36 = vpack.c.bf16 %v955_v35, %v954_v34 }
  0x28   : > { %1102 = vmatmul.mubr.f32.vlgmr.msra.gmra.mrb[0].mxu0 %v1569_v13  ;;  %1402 = vmatpush3.bf16.msra.mxu1 %v1399_v37 }
  0x29   : > { %1314 = vmatpush3.bf16.msra.mxu0 %v1311_v43  ;;  %1136 = vmatprep.mubr.f32.mxu0 %v233_v48  ;;  %v1407_v43 = vpack.c.bf16 %v532_v42, %v531_v41 }
  0x2a   : > { %1316 = vmatprep.subr.bf16.mxu0 %v1315_v47  ;;  %1404 = vmatprep.subr.bf16.mxu1 %v1403_v40 }
  0x2c   : > { %1406 = vmatpush3.bf16.msra.mxu1 %v1403_v40 }
  0x2d   : > { %1318 = vmatpush3.bf16.msra.mxu0 %v1315_v47  ;;  %1408 = vmatprep.subr.bf16.mxu1 %v1407_v43 }
  0x2e   : > { %1320 = vmatprep.subr.bf16.mxu0 %v1319_v51 }
  0x31   : > { %1322 = vmatpush3.bf16.msra.mxu0 %v1319_v51 }
  0x32   : > { %1324 = vmatprep.subr.bf16.mxu0 %v1323_v54 }
  0x35   : > { %1326 = vmatpush3.bf16.msra.mxu0 %v1323_v54  ;;  %v535_v54 = vld [vmem:[%s1858_s3 + $0x20] sm:$0xff] }
  0x36   : > { %1328 = vmatprep.subr.bf16.mxu0 %v1327_v57  ;;  %v1415_v56 = vpack.c.bf16 %v536_v55, %v535_v54 }
  0x39   : > { %1330 = vmatpush3.bf16.msra.mxu0 %v1327_v57  ;;  %v537_v57 = vld [vmem:[%s1858_s3 + $0x30] sm:$0xff] }
  0x3a   : > { %1332 = vmatprep.subr.bf16.mxu0 %v1331_v60 }
  0x3d   : > { %1334 = vmatpush3.bf16.msra.mxu0 %v1331_v60  ;;  %v1419_v60 = vpack.c.bf16 %v538_v58, %v537_v57 }
  0x3e   : > { %1336 = vmatprep.subr.bf16.mxu0 %v1335_v63 }
  0x41   : > { %1338 = vmatpush3.bf16.msra.mxu0 %v1335_v63  ;;  %v1423_v63 = vpack.c.bf16 %v540_v62, %v539_v61 }
  0x42   : > { %1340 = vmatprep.subr.bf16.mxu0 %v1339_v2 }
  0x45   : > { %1342 = vmatpush3.bf16.msra.mxu0 %v1339_v2  ;;  %v1427_v2 = vpack.c.bf16 %v542_v1, %v541_v0 }
  0x46   : > { %1344 = vmatprep.subr.bf16.mxu0 %v1343_v5 }
  0x48   : > { %1137 = vmatmul.mubr.f32.vlgmr.msra.gmra.mrb[0].mxu0 %v234_v8  ;;  %v1435_v8 = vpack.c.bf16 %v546_v7, %v545_v6 }
  0x49   : > { %1346 = vmatpush3.bf16.msra.mxu0 %v1343_v5  ;;  %1171 = vmatprep.mubr.f32.mxu0 %v420_v10  ;;  %v1431_v5 = vpack.c.bf16 %v544_v4, %v543_v3  ;;  %v941_v10 = vld [vmem:[%s1858_s3 + $0x108] sm:$0xff] }
  0x4a   : > { %1348 = vmatprep.subr.bf16.mxu0 %v1347_v9 }
  0x4d   : > { %1350 = vmatpush3.bf16.msra.mxu0 %v1347_v9  ;;  %v940_v9 = vld [vmem:[%s1858_s3 + $0x100] sm:$0xff] }
  0x4e   : > { %1352 = vmatprep.subr.bf16.mxu0 %v1351_v15  ;;  %v1439_v11 = vpack.c.bf16 %v941_v10, %v940_v9 }
  0x51   : > { %1354 = vmatpush3.bf16.msra.mxu0 %v1351_v15  ;;  %v943_v15 = vld [vmem:[%s1858_s3 + $0x118] sm:$0xff] }
  0x52   : > { %1356 = vmatprep.subr.bf16.mxu0 %v1355_v18  ;;  %v1443_v16 = vpack.c.bf16 %v943_v15, %v942_v14 }
  0x55   : > { %1358 = vmatpush3.bf16.msra.mxu0 %v1355_v18  ;;  %v944_v18 = vld [vmem:[%s1858_s3 + $0x120] sm:$0xff] }
  0x56   : > { %1360 = vmatprep.subr.bf16.mxu0 %v1359_v21 }
  0x59   : > { %1362 = vmatpush3.bf16.msra.mxu0 %v1359_v21  ;;  %v1447_v21 = vpack.c.bf16 %v945_v19, %v944_v18 }
  0x5a   : > { %1364 = vmatprep.subr.bf16.mxu0 %v1363_v24 }
  0x5d   : > { %1366 = vmatpush3.bf16.msra.mxu0 %v1363_v24  ;;  %v1451_v24 = vpack.c.bf16 %v947_v23, %v946_v22 }
  0x5e   : > { %1368 = vmatprep.subr.bf16.mxu0 %v1367_v27 }
  0x61   : > { %1370 = vmatpush3.bf16.msra.mxu0 %v1367_v27  ;;  %v1455_v27 = vpack.c.bf16 %v949_v26, %v948_v25 }
  0x62   : > { %1372 = vmatprep.subr.bf16.mxu0 %v1371_v30 }
  0x65   : > { %1374 = vmatpush3.bf16.msra.mxu0 %v1371_v30  ;;  %v1459_v30 = vpack.c.bf16 %v951_v29, %v950_v28 }
  0x68   : > { %1172 = vmatmul.mubr.f32.vlgmr.msra.gmra.mrb[0].mxu0 %v421_v31  ;;  %v952_v31 = vld [vmem:[%s1858_s3 + $0x160] sm:$0xff] }
  0x69   : > { %v1463_v33 = vpack.c.bf16 %v953_v32, %v952_v31 }
 0x13b   : > { %v1173_v45 = vpop.f32.mrb[0].mxu0 }
 0x13c   : > { %v524_v46 = vadd.f32 %v1173_v45, %v923_v44  ;;  %v505_v47 = vpop.f32.mrb[1].mxu0 }
 0x13d   : > { %v523_v48 = vadd.f32 %v923_v44, %v505_v47 }
 0x13e   : > { %v526_v51 = vmax.f32 %v524_v46, 0.0 }
 0x13f   : > { %v525_v52 = vmax.f32 %v523_v48, 0.0 }
 0x140   : > { %528 = vst [vmem:[#allocation3 + $0x9] sm:$0xff] %v526_v51 }
 0x141   : > { %527 = vst [vmem:[#allocation3 + $0x1] sm:$0xff] %v525_v52  ;;  %1206 = vmatprep.mubr.f32.mxu1 %v525_v52 }
 0x142   : > { %1207 = vmatmul.mubr.f32.vlgmr.msra.gmra.mrb[0].mxu1 %v526_v51 }
 0x143   : > { %1410 = vmatpush3.bf16.msra.mxu1 %v1407_v43 }
 0x144   : > { %1412 = vmatprep.subr.bf16.mxu1 %v1411_v53 }
 0x147   : > { %1414 = vmatpush3.bf16.msra.mxu1 %v1411_v53  ;;  %v717_v37 = vld [vmem:[#allocation3 + $0xa] sm:$0xff] }
 0x148   : > { %v529_v59 = vld [vmem:[#allocation3] sm:$0xff]  ;;  %1416 = vmatprep.subr.bf16.mxu1 %v1415_v56  ;;  %v530_v17 = vld [vmem:[#allocation3 + $0x8] sm:$0xff] }
 0x149   : > { %1241 = vmatprep.mubr.f32.mxu1 %v529_v59  ;;  %v716_v20 = vld [vmem:[#allocation3 + $0x2] sm:$0xff] }
 0x14b   : > { %1418 = vmatpush3.bf16.msra.mxu1 %v1415_v56 }
 0x14c   : > { %1420 = vmatprep.subr.bf16.mxu1 %v1419_v60 }
 0x14f   : > { %1422 = vmatpush3.bf16.msra.mxu1 %v1419_v60 }
 0x150   : > { %1424 = vmatprep.subr.bf16.mxu1 %v1423_v63 }
 0x153   : > { %1426 = vmatpush3.bf16.msra.mxu1 %v1423_v63 }
 0x154   : > { %1428 = vmatprep.subr.bf16.mxu1 %v1427_v2 }
 0x157   : > { %1430 = vmatpush3.bf16.msra.mxu1 %v1427_v2 }
 0x158   : > { %1432 = vmatprep.subr.bf16.mxu1 %v1431_v5 }
 0x15b   : > { %1434 = vmatpush3.bf16.msra.mxu1 %v1431_v5 }
 0x15c   : > { %1436 = vmatprep.subr.bf16.mxu1 %v1435_v8 }
 0x15f   : > { %1438 = vmatpush3.bf16.msra.mxu1 %v1435_v8 }
 0x160   : > { %1440 = vmatprep.subr.bf16.mxu1 %v1439_v11 }
 0x162   : > { %1242 = vmatmul.mubr.f32.vlgmr.msra.gmra.mrb[0].mxu1 %v530_v17 }
 0x163   : > { %1442 = vmatpush3.bf16.msra.mxu1 %v1439_v11  ;;  %1276 = vmatprep.mubr.f32.mxu1 %v716_v20 }
 0x164   : > { %1444 = vmatprep.subr.bf16.mxu1 %v1443_v16 }
 0x167   : > { %1446 = vmatpush3.bf16.msra.mxu1 %v1443_v16 }
 0x168   : > { %1448 = vmatprep.subr.bf16.mxu1 %v1447_v21 }
 0x16b   : > { %1450 = vmatpush3.bf16.msra.mxu1 %v1447_v21 }
 0x16c   : > { %1452 = vmatprep.subr.bf16.mxu1 %v1451_v24 }
 0x16f   : > { %1454 = vmatpush3.bf16.msra.mxu1 %v1451_v24 }
 0x170   : > { %1456 = vmatprep.subr.bf16.mxu1 %v1455_v27 }
 0x173   : > { %1458 = vmatpush3.bf16.msra.mxu1 %v1455_v27 }
 0x174   : > { %1460 = vmatprep.subr.bf16.mxu1 %v1459_v30 }
 0x177   : > { %1462 = vmatpush3.bf16.msra.mxu1 %v1459_v30 }
 0x178   : > { %1464 = vmatprep.subr.bf16.mxu1 %v1463_v33 }
 0x17b   : > { %1466 = vmatpush3.bf16.msra.mxu1 %v1463_v33 }
 0x17c   : > { %1468 = vmatprep.subr.bf16.mxu1 %v1467_v36 }
 0x17f   : > { %1470 = vmatpush3.bf16.msra.mxu1 %v1467_v36 }
 0x182   : > { %1277 = vmatmul.mubr.f32.vlgmr.msra.gmra.mrb[0].mxu1 %v717_v37 }
 0x255   : > { %v1278_v39 = vpop.f32.mrb[0].mxu1 }
 0x256   : > { %v820_v40 = vadd.f32 %v1278_v39, %v956_v38  ;;  %v801_v41 = vpop.f32.mrb[1].mxu1 }
 0x257   : > { %v819_v42 = vadd.f32 %v956_v38, %v801_v41 }
 0x258   : > { %v822_v43 = vadd.f32 %v820_v40, %v1569_v13 }
 0x259   : > { %v821_v44 = vadd.f32 %v819_v42, %v1567_v12 }
 0x25a   : > { %v824_v45 = vmax.f32 %v822_v43, 0.0 }
 0x25b   : > { %v823_v46 = vmax.f32 %v821_v44, 0.0 }
 0x25c   : > { %826 = vst [vmem:[%s224_s23 + $0x8] sm:$0xff] %v824_v45 }
 0x25d   : > { %825 = vst [vmem:[%s224_s23] sm:$0xff] %v823_v46 }
 0x25e PF: > { %s15_s18 = sadd.s32 1, %s1494_s18  }
 0x25f   : > { %p12_p4 = scmp.ge.s32.totalorder %s15_s18, 4  }
 0x261   :  { %14 = sbr.rel (!%p12_p4) target bundleno = 1 (0x1), region = 74 }

</bundles_post_ra>
